<compile_context>
chip_gen: v7x
topology: tpu7x:2x2x1
jax: 0.10.0
libtpu: 0.0.40
codegen_flags: <defaults>
</compile_context>

<pallas_src>
import functools

import jax
import jax.numpy as jnp
from jax.experimental import pallas as pl
from jax.experimental.pallas import tpu as pltpu


def _round_up(v, m):
    return (v + m - 1) // m * m


def _spectral_atomwise_kernel(
    x_ref,       # (TN, M, Cs)    atom tile of x
    wcomb_ref,   # (Cs, (L+1)*H)  [ w1[l=0] | scalar_mlp weight ]   (compute dtype)
    bcomb_ref,   # (1, (L+1)*H)   [ b1      | scalar_mlp bias   ]   (f32)
    w1v_ref,     # (L, Cs, H)     so3_linear_1 weights, degrees 1..L (compute dtype)
    w2_ref,      # (L+1, H, Cs)   so3_linear_2 weights               (compute dtype)
    b2_ref,      # (1, Cs)        so3_linear_2 bias (l=0 row only)   (f32)
    o_ref,       # (TN, M, Cs)
    *,
    lmax: int,
    hidden_channels: int,
    compute_dtype,
):
    H, L = hidden_channels, lmax

    # ---- fused l=0 path + gating matmul (one lane-wide MXU op) ----------------------
    x0 = x_ref[:, 0, :].astype(compute_dtype)                       # (TN, Cs)
    t = jnp.dot(x0, wcomb_ref[...], preferred_element_type=jnp.float32)
    t = t + bcomb_ref[...]                                          # (TN, (L+1)*H)
    s = t * jax.nn.sigmoid(t)                                       # SiLU in f32
    y0 = s[:, :H]                                                   # SiLU(x1[l=0] + b1)
    gates = jax.nn.sigmoid(s[:, H:])                                # (TN, L*H) gate values

    out0 = jnp.dot(y0.astype(compute_dtype), w2_ref[0],
                   preferred_element_type=jnp.float32) + b2_ref[...]
    o_ref[:, 0, :] = out0.astype(o_ref.dtype)

    # ---- degrees l >= 1 (weights read once per degree, reused for 2l+1 coeffs) ------
    for l in range(1, L + 1):
        w1_l = w1v_ref[l - 1]                                       # (Cs, H)
        w2_l = w2_ref[l]                                            # (H, Cs)
        gate_l = gates[:, (l - 1) * H: l * H]                       # (TN, H)
        for j in range(2 * l + 1):
            m = l * l + j
            xm = x_ref[:, m, :].astype(compute_dtype)               # (TN, Cs)
            x1 = jnp.dot(xm, w1_l, preferred_element_type=jnp.float32)
            y = (x1 * gate_l).astype(compute_dtype)
            out = jnp.dot(y, w2_l, preferred_element_type=jnp.float32)
            o_ref[:, m, :] = out.astype(o_ref.dtype)


def spectral_atomwise(x, params, *, lmax, sphere_channels, hidden_channels,
                      tile_n=None, compute_dtype=None,
                      vmem_budget_bytes=48 << 20):
    """Pallas forward of SpectralAtomwise. x: [N, (lmax+1)^2, sphere_channels]."""
    N, M, Cs = x.shape
    assert M == (lmax + 1) ** 2 and Cs == sphere_channels
    assert lmax >= 1
    H, L = hidden_channels, lmax
    compute_dtype = jnp.dtype(compute_dtype) if compute_dtype is not None else jnp.dtype(x.dtype)

    # ---- weight packing (tiny, one-time; no per-m expansion) ------------------------
    wg = params["wg"]            # (L, Cs, H)   scalar_mlp weight, per gate slot
    bg = params["bg"]            # (L, 1, H)
    w1 = params["w1"]            # (L+1, Cs, H) so3_linear_1 per-degree weights
    b1 = params["b1"]            # (1, H)
    w2 = params["w2"]            # (L+1, H, Cs) so3_linear_2 per-degree weights
    b2 = params["b2"]            # (1, Cs)

    wg_flat = jnp.transpose(wg, (1, 0, 2)).reshape(Cs, L * H)
    bg_flat = bg.reshape(1, L * H)
    wcomb = jnp.concatenate([w1[0], wg_flat], axis=1).astype(compute_dtype)   # (Cs, (L+1)*H)
    bcomb = jnp.concatenate([b1, bg_flat], axis=1).astype(jnp.float32)        # (1, (L+1)*H)
    w1v = w1[1:].astype(compute_dtype)                                        # (L, Cs, H)
    w2c = w2.astype(compute_dtype)                                            # (L+1, H, Cs)
    b2c = b2.astype(jnp.float32)                                              # (1, Cs)

    # ---- atom tiling (v7x-safe VMEM budget; >=2 tiles so both v7x TCs get work) -----
    itemsize = jnp.dtype(x.dtype).itemsize
    per_atom_bytes = M * Cs * itemsize
    if tile_n is None:
        tn = vmem_budget_bytes // (4 * per_atom_bytes)   # 2x double-buffered in + out
        tn = int(max(8, min(tn, 512)))
        if N > 8:
            tn = min(tn, _round_up(pl.cdiv(N, 2), 8))
        tile_n = max(8, (tn // 8) * 8)
    TN = int(tile_n)
    N_pad = _round_up(N, TN)
    x_in = x if N_pad == N else jnp.pad(x, ((0, N_pad - N), (0, 0), (0, 0)))
    num_tiles = N_pad // TN

    kernel = functools.partial(
        _spectral_atomwise_kernel,
        lmax=L, hidden_channels=H, compute_dtype=compute_dtype)

    # advisory cost estimate for the XLA scheduler
    flops = 2 * N_pad * Cs * H * (2 * M + L)
    transcendentals = N_pad * (2 * L + 1) * H
    weight_bytes = ((wcomb.size + w1v.size + w2c.size) * compute_dtype.itemsize
                    + (bcomb.size + b2c.size) * 4)
    bytes_accessed = 2 * N_pad * M * Cs * itemsize + weight_bytes

    block_bytes = TN * M * Cs * itemsize
    vmem_limit = int(min(max(4 * block_bytes + 2 * weight_bytes + (4 << 20), 32 << 20),
                         100 << 20))

    out = pl.pallas_call(
        kernel,
        out_shape=jax.ShapeDtypeStruct((N_pad, M, Cs), x.dtype),
        grid=(num_tiles,),
        in_specs=[
            pl.BlockSpec((TN, M, Cs), lambda n: (n, 0, 0)),          # x tile
            pl.BlockSpec((Cs, (L + 1) * H), lambda n: (0, 0)),       # fused w1[0]|wg (resident)
            pl.BlockSpec((1, (L + 1) * H), lambda n: (0, 0)),        # fused b1|bg
            pl.BlockSpec((L, Cs, H), lambda n: (0, 0, 0)),           # w1 degrees 1..L (resident)
            pl.BlockSpec((L + 1, H, Cs), lambda n: (0, 0, 0)),       # w2 (resident)
            pl.BlockSpec((1, Cs), lambda n: (0, 0)),                 # b2
        ],
        out_specs=pl.BlockSpec((TN, M, Cs), lambda n: (n, 0, 0)),
        compiler_params=pltpu.CompilerParams(
            dimension_semantics=("parallel",),
            vmem_limit_bytes=vmem_limit,
        ),
        cost_estimate=pl.CostEstimate(
            flops=flops, transcendentals=transcendentals,
            bytes_accessed=bytes_accessed),
    )(x_in, wcomb, bcomb, w1v, w2c, b2c)

    return out[:N] if N_pad != N else out


def spectral_atomwise_ref(x, params, *, lmax, hidden_channels):
    """Pure-JAX reference mirroring the PyTorch forward."""
    N, M, Cs = x.shape
    H, L = hidden_channels, lmax
    expand = jnp.asarray(
        sum(([l] * (2 * l + 1) for l in range(lmax + 1)), []), dtype=jnp.int32)

    x0 = x[:, 0, :]
    g = jnp.einsum("nc,lch->nlh", x0, params["wg"]) + params["bg"].reshape(1, L, H)
    gating = jax.nn.silu(g)                        # scalar_mlp output
    gate = jax.nn.sigmoid(gating)                  # (N, L, H)

    w1e = params["w1"][expand]                     # (M, Cs, H)
    x1 = jnp.einsum("nmc,mch->nmh", x, w1e)
    x1 = x1.at[:, 0, :].add(params["b1"][0])       # bias on l=0 row only

    y0 = jax.nn.silu(x1[:, 0:1, :])
    gate_exp = gate[:, jnp.maximum(expand[1:] - 1, 0), :]
    yv = x1[:, 1:, :] * gate_exp
    y = jnp.concatenate([y0, yv], axis=1)

    w2e = params["w2"][expand]                     # (M, H, Cs)
    out = jnp.einsum("nmh,mhc->nmc", y, w2e)
    out = out.at[:, 0, :].add(params["b2"][0])
    return out


if __name__ == "__main__":
    N, lmax = 16, 2
    sphere_channels, hidden_channels = 32, 16
    M = (lmax + 1) ** 2
    L = lmax

    key = jax.random.PRNGKey(0)
    ks = jax.random.split(key, 7)
    params = {
        "wg": jax.random.normal(ks[0], (L, sphere_channels, hidden_channels), jnp.float32)
        / jnp.sqrt(jnp.float32(sphere_channels)),
        "bg": 0.1 * jax.random.normal(ks[1], (L, 1, hidden_channels), jnp.float32),
        "w1": jax.random.normal(ks[2], (lmax + 1, sphere_channels, hidden_channels), jnp.float32)
        / jnp.sqrt(jnp.float32(sphere_channels)),
        "b1": 0.1 * jax.random.normal(ks[3], (1, hidden_channels), jnp.float32),
        "w2": jax.random.normal(ks[4], (lmax + 1, hidden_channels, sphere_channels), jnp.float32)
        / jnp.sqrt(jnp.float32(hidden_channels)),
        "b2": 0.1 * jax.random.normal(ks[5], (1, sphere_channels), jnp.float32),
    }
    x = jax.random.normal(ks[6], (N, M, sphere_channels), jnp.float32)

    out = spectral_atomwise(
        x, params, lmax=lmax, sphere_channels=sphere_channels,
        hidden_channels=hidden_channels)
    out = jax.block_until_ready(out)

    ref = spectral_atomwise_ref(x, params, lmax=lmax, hidden_channels=hidden_channels)
    assert out.shape == (N, M, sphere_channels)
    max_err = float(jnp.max(jnp.abs(out - ref)))
    assert jnp.allclose(out, ref, rtol=1e-2, atol=1e-2), max_err

    print("KERNEL_OK")
</pallas_src>

<mosaic_0001>
module attributes {stable_mosaic.version = 11 : i64} {
  func.func @_spectral_atomwise_kernel(%arg0: i32, %arg1: memref<8x9x32xf32, #tpu.memory_space<vmem>>, %arg2: memref<32x48xf32, #tpu.memory_space<vmem>>, %arg3: memref<1x48xf32, #tpu.memory_space<vmem>>, %arg4: memref<2x32x16xf32, #tpu.memory_space<vmem>>, %arg5: memref<3x16x32xf32, #tpu.memory_space<vmem>>, %arg6: memref<1x32xf32, #tpu.memory_space<vmem>>, %arg7: memref<8x9x32xf32, #tpu.memory_space<vmem>>) attributes {dimension_semantics = [#tpu.dimension_semantics<parallel>], iteration_bounds = array<i64: 2>, scalar_prefetch = 0 : i64, scratch_operands = 0 : i64, tpu.core_type = #tpu.core_type<tc>, window_params = [{transform_indices = @transform_0, window_bounds = array<i64: 8, 9, 32>}, {pipeline_mode = #tpu.pipeline_mode<synchronous>, transform_indices = @transform_1, window_bounds = array<i64: 32, 48>}, {pipeline_mode = #tpu.pipeline_mode<synchronous>, transform_indices = @transform_2, window_bounds = array<i64: 1, 48>}, {pipeline_mode = #tpu.pipeline_mode<synchronous>, transform_indices = @transform_3, window_bounds = array<i64: 2, 32, 16>}, {pipeline_mode = #tpu.pipeline_mode<synchronous>, transform_indices = @transform_4, window_bounds = array<i64: 3, 16, 32>}, {pipeline_mode = #tpu.pipeline_mode<synchronous>, transform_indices = @transform_5, window_bounds = array<i64: 1, 32>}, {transform_indices = @transform_6, window_bounds = array<i64: 8, 9, 32>}]} {
    %c0 = arith.constant 0 : index
    %c0_0 = arith.constant 0 : index
    %c0_1 = arith.constant 0 : index
    %0 = vector.load %arg1[%c0, %c0_0, %c0_1] : memref<8x9x32xf32, #tpu.memory_space<vmem>>, vector<8x1x32xf32>
    %1 = vector.shape_cast %0 : vector<8x1x32xf32> to vector<8x32xf32>
    %c0_2 = arith.constant 0 : index
    %c0_3 = arith.constant 0 : index
    %2 = vector.load %arg2[%c0_2, %c0_3] : memref<32x48xf32, #tpu.memory_space<vmem>>, vector<32x48xf32>
    %cst = arith.constant dense<0.000000e+00> : vector<8x48xf32>
    %3 = tpu.matmul %1, %2, %cst {dimension_numbers = #tpu.dot_dimension_numbers<[1], [0], [0], [1], [0, 0, 1, 1], [], []>} : vector<8x32xf32>, vector<32x48xf32>, vector<8x48xf32> -> vector<8x48xf32>
    %c0_4 = arith.constant 0 : index
    %c0_5 = arith.constant 0 : index
    %4 = vector.load %arg3[%c0_4, %c0_5] : memref<1x48xf32, #tpu.memory_space<vmem>>, vector<1x48xf32>
    %5 = vector.broadcast %4 : vector<1x48xf32> to vector<8x48xf32>
    %6 = arith.addf %3, %5 : vector<8x48xf32>
    %7 = arith.negf %6 : vector<8x48xf32>
    %8 = math.exp %7 : vector<8x48xf32>
    %cst_6 = arith.constant 1.000000e+00 : f32
    %9 = vector.broadcast %cst_6 : f32 to vector<8x48xf32>
    %10 = arith.addf %9, %8 : vector<8x48xf32>
    %11 = arith.divf %9, %10 : vector<8x48xf32>
    %12 = arith.mulf %6, %11 : vector<8x48xf32>
    %13 = vector.extract_strided_slice %12 {offsets = [0, 0], sizes = [8, 16], strides = [1, 1]} : vector<8x48xf32> to vector<8x16xf32>
    %14 = vector.extract_strided_slice %12 {offsets = [0, 16], sizes = [8, 32], strides = [1, 1]} : vector<8x48xf32> to vector<8x32xf32>
    %15 = arith.negf %14 : vector<8x32xf32>
    %16 = math.exp %15 : vector<8x32xf32>
    %cst_7 = arith.constant 1.000000e+00 : f32
    %17 = vector.broadcast %cst_7 : f32 to vector<8x32xf32>
    %18 = arith.addf %17, %16 : vector<8x32xf32>
    %19 = arith.divf %17, %18 : vector<8x32xf32>
    %c0_8 = arith.constant 0 : index
    %c0_9 = arith.constant 0 : index
    %c0_10 = arith.constant 0 : index
    %20 = vector.load %arg5[%c0_8, %c0_9, %c0_10] : memref<3x16x32xf32, #tpu.memory_space<vmem>>, vector<1x16x32xf32>
    %21 = vector.shape_cast %20 : vector<1x16x32xf32> to vector<16x32xf32>
    %cst_11 = arith.constant dense<0.000000e+00> : vector<8x32xf32>
    %22 = tpu.matmul %13, %21, %cst_11 {dimension_numbers = #tpu.dot_dimension_numbers<[1], [0], [0], [1], [0, 0, 1, 1], [], []>} : vector<8x16xf32>, vector<16x32xf32>, vector<8x32xf32> -> vector<8x32xf32>
    %c0_12 = arith.constant 0 : index
    %c0_13 = arith.constant 0 : index
    %23 = vector.load %arg6[%c0_12, %c0_13] : memref<1x32xf32, #tpu.memory_space<vmem>>, vector<1x32xf32>
    %24 = vector.broadcast %23 : vector<1x32xf32> to vector<8x32xf32>
    %25 = arith.addf %22, %24 : vector<8x32xf32>
    %c0_14 = arith.constant 0 : index
    %c0_15 = arith.constant 0 : index
    %c0_16 = arith.constant 0 : index
    %26 = vector.load %arg7[%c0_14, %c0_15, %c0_16] : memref<8x9x32xf32, #tpu.memory_space<vmem>>, vector<8x1x32xf32>
    %27 = vector.shape_cast %26 : vector<8x1x32xf32> to vector<8x32xf32>
    %28 = vector.shape_cast %25 : vector<8x32xf32> to vector<8x1x32xf32>
    tpu.vector_store %arg7[%c0_14, %c0_15, %c0_16], %28 {strides = array<i32>} : memref<8x9x32xf32, #tpu.memory_space<vmem>>, vector<8x1x32xf32>,
    %c0_17 = arith.constant 0 : index
    %c0_18 = arith.constant 0 : index
    %c0_19 = arith.constant 0 : index
    %29 = vector.load %arg4[%c0_17, %c0_18, %c0_19] : memref<2x32x16xf32, #tpu.memory_space<vmem>>, vector<1x32x16xf32>
    %30 = vector.shape_cast %29 : vector<1x32x16xf32> to vector<32x16xf32>
    %c1 = arith.constant 1 : index
    %c0_20 = arith.constant 0 : index
    %c0_21 = arith.constant 0 : index
    %31 = vector.load %arg5[%c1, %c0_20, %c0_21] : memref<3x16x32xf32, #tpu.memory_space<vmem>>, vector<1x16x32xf32>
    %32 = vector.shape_cast %31 : vector<1x16x32xf32> to vector<16x32xf32>
    %33 = vector.extract_strided_slice %19 {offsets = [0, 0], sizes = [8, 16], strides = [1, 1]} : vector<8x32xf32> to vector<8x16xf32>
    %c0_22 = arith.constant 0 : index
    %c1_23 = arith.constant 1 : index
    %c0_24 = arith.constant 0 : index
    %34 = vector.load %arg1[%c0_22, %c1_23, %c0_24] : memref<8x9x32xf32, #tpu.memory_space<vmem>>, vector<8x1x32xf32>
    %35 = vector.shape_cast %34 : vector<8x1x32xf32> to vector<8x32xf32>
    %cst_25 = arith.constant dense<0.000000e+00> : vector<8x16xf32>
    %36 = tpu.matmul %35, %30, %cst_25 {dimension_numbers = #tpu.dot_dimension_numbers<[1], [0], [0], [1], [0, 0, 1, 1], [], []>} : vector<8x32xf32>, vector<32x16xf32>, vector<8x16xf32> -> vector<8x16xf32>
    %37 = arith.mulf %36, %33 : vector<8x16xf32>
    %cst_26 = arith.constant dense<0.000000e+00> : vector<8x32xf32>
    %38 = tpu.matmul %37, %32, %cst_26 {dimension_numbers = #tpu.dot_dimension_numbers<[1], [0], [0], [1], [0, 0, 1, 1], [], []>} : vector<8x16xf32>, vector<16x32xf32>, vector<8x32xf32> -> vector<8x32xf32>
    %c0_27 = arith.constant 0 : index
    %c1_28 = arith.constant 1 : index
    %c0_29 = arith.constant 0 : index
    %39 = vector.load %arg7[%c0_27, %c1_28, %c0_29] : memref<8x9x32xf32, #tpu.memory_space<vmem>>, vector<8x1x32xf32>
    %40 = vector.shape_cast %39 : vector<8x1x32xf32> to vector<8x32xf32>
    %41 = vector.shape_cast %38 : vector<8x32xf32> to vector<8x1x32xf32>
    tpu.vector_store %arg7[%c0_27, %c1_28, %c0_29], %41 {strides = array<i32>} : memref<8x9x32xf32, #tpu.memory_space<vmem>>, vector<8x1x32xf32>,
    %c0_30 = arith.constant 0 : index
    %c2 = arith.constant 2 : index
    %c0_31 = arith.constant 0 : index
    %42 = vector.load %arg1[%c0_30, %c2, %c0_31] : memref<8x9x32xf32, #tpu.memory_space<vmem>>, vector<8x1x32xf32>
    %43 = vector.shape_cast %42 : vector<8x1x32xf32> to vector<8x32xf32>
    %cst_32 = arith.constant dense<0.000000e+00> : vector<8x16xf32>
    %44 = tpu.matmul %43, %30, %cst_32 {dimension_numbers = #tpu.dot_dimension_numbers<[1], [0], [0], [1], [0, 0, 1, 1], [], []>} : vector<8x32xf32>, vector<32x16xf32>, vector<8x16xf32> -> vector<8x16xf32>
    %45 = arith.mulf %44, %33 : vector<8x16xf32>
    %cst_33 = arith.constant dense<0.000000e+00> : vector<8x32xf32>
    %46 = tpu.matmul %45, %32, %cst_33 {dimension_numbers = #tpu.dot_dimension_numbers<[1], [0], [0], [1], [0, 0, 1, 1], [], []>} : vector<8x16xf32>, vector<16x32xf32>, vector<8x32xf32> -> vector<8x32xf32>
    %c0_34 = arith.constant 0 : index
    %c2_35 = arith.constant 2 : index
    %c0_36 = arith.constant 0 : index
    %47 = vector.load %arg7[%c0_34, %c2_35, %c0_36] : memref<8x9x32xf32, #tpu.memory_space<vmem>>, vector<8x1x32xf32>
    %48 = vector.shape_cast %47 : vector<8x1x32xf32> to vector<8x32xf32>
    %49 = vector.shape_cast %46 : vector<8x32xf32> to vector<8x1x32xf32>
    tpu.vector_store %arg7[%c0_34, %c2_35, %c0_36], %49 {strides = array<i32>} : memref<8x9x32xf32, #tpu.memory_space<vmem>>, vector<8x1x32xf32>,
    %c0_37 = arith.constant 0 : index
    %c3 = arith.constant 3 : index
    %c0_38 = arith.constant 0 : index
    %50 = vector.load %arg1[%c0_37, %c3, %c0_38] : memref<8x9x32xf32, #tpu.memory_space<vmem>>, vector<8x1x32xf32>
    %51 = vector.shape_cast %50 : vector<8x1x32xf32> to vector<8x32xf32>
    %cst_39 = arith.constant dense<0.000000e+00> : vector<8x16xf32>
    %52 = tpu.matmul %51, %30, %cst_39 {dimension_numbers = #tpu.dot_dimension_numbers<[1], [0], [0], [1], [0, 0, 1, 1], [], []>} : vector<8x32xf32>, vector<32x16xf32>, vector<8x16xf32> -> vector<8x16xf32>
    %53 = arith.mulf %52, %33 : vector<8x16xf32>
    %cst_40 = arith.constant dense<0.000000e+00> : vector<8x32xf32>
    %54 = tpu.matmul %53, %32, %cst_40 {dimension_numbers = #tpu.dot_dimension_numbers<[1], [0], [0], [1], [0, 0, 1, 1], [], []>} : vector<8x16xf32>, vector<16x32xf32>, vector<8x32xf32> -> vector<8x32xf32>
    %c0_41 = arith.constant 0 : index
    %c3_42 = arith.constant 3 : index
    %c0_43 = arith.constant 0 : index
    %55 = vector.load %arg7[%c0_41, %c3_42, %c0_43] : memref<8x9x32xf32, #tpu.memory_space<vmem>>, vector<8x1x32xf32>
    %56 = vector.shape_cast %55 : vector<8x1x32xf32> to vector<8x32xf32>
    %57 = vector.shape_cast %54 : vector<8x32xf32> to vector<8x1x32xf32>
    tpu.vector_store %arg7[%c0_41, %c3_42, %c0_43], %57 {strides = array<i32>} : memref<8x9x32xf32, #tpu.memory_space<vmem>>, vector<8x1x32xf32>,
    %c1_44 = arith.constant 1 : index
    %c0_45 = arith.constant 0 : index
    %c0_46 = arith.constant 0 : index
    %58 = vector.load %arg4[%c1_44, %c0_45, %c0_46] : memref<2x32x16xf32, #tpu.memory_space<vmem>>, vector<1x32x16xf32>
    %59 = vector.shape_cast %58 : vector<1x32x16xf32> to vector<32x16xf32>
    %c2_47 = arith.constant 2 : index
    %c0_48 = arith.constant 0 : index
    %c0_49 = arith.constant 0 : index
    %60 = vector.load %arg5[%c2_47, %c0_48, %c0_49] : memref<3x16x32xf32, #tpu.memory_space<vmem>>, vector<1x16x32xf32>
    %61 = vector.shape_cast %60 : vector<1x16x32xf32> to vector<16x32xf32>
    %62 = vector.extract_strided_slice %19 {offsets = [0, 16], sizes = [8, 16], strides = [1, 1]} : vector<8x32xf32> to vector<8x16xf32>
    %c0_50 = arith.constant 0 : index
    %c4 = arith.constant 4 : index
    %c0_51 = arith.constant 0 : index
    %63 = vector.load %arg1[%c0_50, %c4, %c0_51] : memref<8x9x32xf32, #tpu.memory_space<vmem>>, vector<8x1x32xf32>
    %64 = vector.shape_cast %63 : vector<8x1x32xf32> to vector<8x32xf32>
    %cst_52 = arith.constant dense<0.000000e+00> : vector<8x16xf32>
    %65 = tpu.matmul %64, %59, %cst_52 {dimension_numbers = #tpu.dot_dimension_numbers<[1], [0], [0], [1], [0, 0, 1, 1], [], []>} : vector<8x32xf32>, vector<32x16xf32>, vector<8x16xf32> -> vector<8x16xf32>
    %66 = arith.mulf %65, %62 : vector<8x16xf32>
    %cst_53 = arith.constant dense<0.000000e+00> : vector<8x32xf32>
    %67 = tpu.matmul %66, %61, %cst_53 {dimension_numbers = #tpu.dot_dimension_numbers<[1], [0], [0], [1], [0, 0, 1, 1], [], []>} : vector<8x16xf32>, vector<16x32xf32>, vector<8x32xf32> -> vector<8x32xf32>
    %c0_54 = arith.constant 0 : index
    %c4_55 = arith.constant 4 : index
    %c0_56 = arith.constant 0 : index
    %68 = vector.load %arg7[%c0_54, %c4_55, %c0_56] : memref<8x9x32xf32, #tpu.memory_space<vmem>>, vector<8x1x32xf32>
    %69 = vector.shape_cast %68 : vector<8x1x32xf32> to vector<8x32xf32>
    %70 = vector.shape_cast %67 : vector<8x32xf32> to vector<8x1x32xf32>
    tpu.vector_store %arg7[%c0_54, %c4_55, %c0_56], %70 {strides = array<i32>} : memref<8x9x32xf32, #tpu.memory_space<vmem>>, vector<8x1x32xf32>,
    %c0_57 = arith.constant 0 : index
    %c5 = arith.constant 5 : index
    %c0_58 = arith.constant 0 : index
    %71 = vector.load %arg1[%c0_57, %c5, %c0_58] : memref<8x9x32xf32, #tpu.memory_space<vmem>>, vector<8x1x32xf32>
    %72 = vector.shape_cast %71 : vector<8x1x32xf32> to vector<8x32xf32>
    %cst_59 = arith.constant dense<0.000000e+00> : vector<8x16xf32>
    %73 = tpu.matmul %72, %59, %cst_59 {dimension_numbers = #tpu.dot_dimension_numbers<[1], [0], [0], [1], [0, 0, 1, 1], [], []>} : vector<8x32xf32>, vector<32x16xf32>, vector<8x16xf32> -> vector<8x16xf32>
    %74 = arith.mulf %73, %62 : vector<8x16xf32>
    %cst_60 = arith.constant dense<0.000000e+00> : vector<8x32xf32>
    %75 = tpu.matmul %74, %61, %cst_60 {dimension_numbers = #tpu.dot_dimension_numbers<[1], [0], [0], [1], [0, 0, 1, 1], [], []>} : vector<8x16xf32>, vector<16x32xf32>, vector<8x32xf32> -> vector<8x32xf32>
    %c0_61 = arith.constant 0 : index
    %c5_62 = arith.constant 5 : index
    %c0_63 = arith.constant 0 : index
    %76 = vector.load %arg7[%c0_61, %c5_62, %c0_63] : memref<8x9x32xf32, #tpu.memory_space<vmem>>, vector<8x1x32xf32>
    %77 = vector.shape_cast %76 : vector<8x1x32xf32> to vector<8x32xf32>
    %78 = vector.shape_cast %75 : vector<8x32xf32> to vector<8x1x32xf32>
    tpu.vector_store %arg7[%c0_61, %c5_62, %c0_63], %78 {strides = array<i32>} : memref<8x9x32xf32, #tpu.memory_space<vmem>>, vector<8x1x32xf32>,
    %c0_64 = arith.constant 0 : index
    %c6 = arith.constant 6 : index
    %c0_65 = arith.constant 0 : index
    %79 = vector.load %arg1[%c0_64, %c6, %c0_65] : memref<8x9x32xf32, #tpu.memory_space<vmem>>, vector<8x1x32xf32>
    %80 = vector.shape_cast %79 : vector<8x1x32xf32> to vector<8x32xf32>
    %cst_66 = arith.constant dense<0.000000e+00> : vector<8x16xf32>
    %81 = tpu.matmul %80, %59, %cst_66 {dimension_numbers = #tpu.dot_dimension_numbers<[1], [0], [0], [1], [0, 0, 1, 1], [], []>} : vector<8x32xf32>, vector<32x16xf32>, vector<8x16xf32> -> vector<8x16xf32>
    %82 = arith.mulf %81, %62 : vector<8x16xf32>
    %cst_67 = arith.constant dense<0.000000e+00> : vector<8x32xf32>
    %83 = tpu.matmul %82, %61, %cst_67 {dimension_numbers = #tpu.dot_dimension_numbers<[1], [0], [0], [1], [0, 0, 1, 1], [], []>} : vector<8x16xf32>, vector<16x32xf32>, vector<8x32xf32> -> vector<8x32xf32>
    %c0_68 = arith.constant 0 : index
    %c6_69 = arith.constant 6 : index
    %c0_70 = arith.constant 0 : index
    %84 = vector.load %arg7[%c0_68, %c6_69, %c0_70] : memref<8x9x32xf32, #tpu.memory_space<vmem>>, vector<8x1x32xf32>
    %85 = vector.shape_cast %84 : vector<8x1x32xf32> to vector<8x32xf32>
    %86 = vector.shape_cast %83 : vector<8x32xf32> to vector<8x1x32xf32>
    tpu.vector_store %arg7[%c0_68, %c6_69, %c0_70], %86 {strides = array<i32>} : memref<8x9x32xf32, #tpu.memory_space<vmem>>, vector<8x1x32xf32>,
    %c0_71 = arith.constant 0 : index
    %c7 = arith.constant 7 : index
    %c0_72 = arith.constant 0 : index
    %87 = vector.load %arg1[%c0_71, %c7, %c0_72] : memref<8x9x32xf32, #tpu.memory_space<vmem>>, vector<8x1x32xf32>
    %88 = vector.shape_cast %87 : vector<8x1x32xf32> to vector<8x32xf32>
    %cst_73 = arith.constant dense<0.000000e+00> : vector<8x16xf32>
    %89 = tpu.matmul %88, %59, %cst_73 {dimension_numbers = #tpu.dot_dimension_numbers<[1], [0], [0], [1], [0, 0, 1, 1], [], []>} : vector<8x32xf32>, vector<32x16xf32>, vector<8x16xf32> -> vector<8x16xf32>
    %90 = arith.mulf %89, %62 : vector<8x16xf32>
    %cst_74 = arith.constant dense<0.000000e+00> : vector<8x32xf32>
    %91 = tpu.matmul %90, %61, %cst_74 {dimension_numbers = #tpu.dot_dimension_numbers<[1], [0], [0], [1], [0, 0, 1, 1], [], []>} : vector<8x16xf32>, vector<16x32xf32>, vector<8x32xf32> -> vector<8x32xf32>
    %c0_75 = arith.constant 0 : index
    %c7_76 = arith.constant 7 : index
    %c0_77 = arith.constant 0 : index
    %92 = vector.load %arg7[%c0_75, %c7_76, %c0_77] : memref<8x9x32xf32, #tpu.memory_space<vmem>>, vector<8x1x32xf32>
    %93 = vector.shape_cast %92 : vector<8x1x32xf32> to vector<8x32xf32>
    %94 = vector.shape_cast %91 : vector<8x32xf32> to vector<8x1x32xf32>
    tpu.vector_store %arg7[%c0_75, %c7_76, %c0_77], %94 {strides = array<i32>} : memref<8x9x32xf32, #tpu.memory_space<vmem>>, vector<8x1x32xf32>,
    %c0_78 = arith.constant 0 : index
    %c8 = arith.constant 8 : index
    %c0_79 = arith.constant 0 : index
    %95 = vector.load %arg1[%c0_78, %c8, %c0_79] : memref<8x9x32xf32, #tpu.memory_space<vmem>>, vector<8x1x32xf32>
    %96 = vector.shape_cast %95 : vector<8x1x32xf32> to vector<8x32xf32>
    %cst_80 = arith.constant dense<0.000000e+00> : vector<8x16xf32>
    %97 = tpu.matmul %96, %59, %cst_80 {dimension_numbers = #tpu.dot_dimension_numbers<[1], [0], [0], [1], [0, 0, 1, 1], [], []>} : vector<8x32xf32>, vector<32x16xf32>, vector<8x16xf32> -> vector<8x16xf32>
    %98 = arith.mulf %97, %62 : vector<8x16xf32>
    %cst_81 = arith.constant dense<0.000000e+00> : vector<8x32xf32>
    %99 = tpu.matmul %98, %61, %cst_81 {dimension_numbers = #tpu.dot_dimension_numbers<[1], [0], [0], [1], [0, 0, 1, 1], [], []>} : vector<8x16xf32>, vector<16x32xf32>, vector<8x32xf32> -> vector<8x32xf32>
    %c0_82 = arith.constant 0 : index
    %c8_83 = arith.constant 8 : index
    %c0_84 = arith.constant 0 : index
    %100 = vector.load %arg7[%c0_82, %c8_83, %c0_84] : memref<8x9x32xf32, #tpu.memory_space<vmem>>, vector<8x1x32xf32>
    %101 = vector.shape_cast %100 : vector<8x1x32xf32> to vector<8x32xf32>
    %102 = vector.shape_cast %99 : vector<8x32xf32> to vector<8x1x32xf32>
    tpu.vector_store %arg7[%c0_82, %c8_83, %c0_84], %102 {strides = array<i32>} : memref<8x9x32xf32, #tpu.memory_space<vmem>>, vector<8x1x32xf32>,
    return
  }
  func.func @transform_0(%arg0: i32) -> (i32, i32, i32) {
    %c0_i32 = arith.constant 0 : i32
    %c0_i32_0 = arith.constant 0 : i32
    %c0_i32_1 = arith.constant 0 : i32
    return %arg0, %c0_i32, %c0_i32_0 : i32, i32, i32
  }
  func.func @transform_1(%arg0: i32) -> (i32, i32) {
    %c0_i32 = arith.constant 0 : i32
    %c0_i32_0 = arith.constant 0 : i32
    %c0_i32_1 = arith.constant 0 : i32
    return %c0_i32, %c0_i32_0 : i32, i32
  }
  func.func @transform_2(%arg0: i32) -> (i32, i32) {
    %c0_i32 = arith.constant 0 : i32
    %c0_i32_0 = arith.constant 0 : i32
    %c0_i32_1 = arith.constant 0 : i32
    return %c0_i32, %c0_i32_0 : i32, i32
  }
  func.func @transform_3(%arg0: i32) -> (i32, i32, i32) {
    %c0_i32 = arith.constant 0 : i32
    %c0_i32_0 = arith.constant 0 : i32
    %c0_i32_1 = arith.constant 0 : i32
    %c0_i32_2 = arith.constant 0 : i32
    return %c0_i32, %c0_i32_0, %c0_i32_1 : i32, i32, i32
  }
  func.func @transform_4(%arg0: i32) -> (i32, i32, i32) {
    %c0_i32 = arith.constant 0 : i32
    %c0_i32_0 = arith.constant 0 : i32
    %c0_i32_1 = arith.constant 0 : i32
    %c0_i32_2 = arith.constant 0 : i32
    return %c0_i32, %c0_i32_0, %c0_i32_1 : i32, i32, i32
  }
  func.func @transform_5(%arg0: i32) -> (i32, i32) {
    %c0_i32 = arith.constant 0 : i32
    %c0_i32_0 = arith.constant 0 : i32
    %c0_i32_1 = arith.constant 0 : i32
    return %c0_i32, %c0_i32_0 : i32, i32
  }
  func.func @transform_6(%arg0: i32) -> (i32, i32, i32) {
    %c0_i32 = arith.constant 0 : i32
    %c0_i32_0 = arith.constant 0 : i32
    %c0_i32_1 = arith.constant 0 : i32
    return %arg0, %c0_i32, %c0_i32_0 : i32, i32, i32
  }
}

</mosaic_0001>

<bundles_post_ra>
// kernel: tpu_custom_call.1
= control target key start
LH: loop header
LB: loop body
LE: loop exit
PB: predicated region body
PF: predicated region fallthrough
CT: control target
= control target key end

     0   :  { %s2991_s21 = smov 0   ;;  %s3543_s0 = inlined_call_operand.vmem [shape: f32[16,9,32], index: 0, kind: input, shape index: {}]   ;;  %s3544_s1 = inlined_call_operand.vmem [shape: f32[32,48], index: 1, kind: input, shape index: {}]   ;;  %s3545_s2 = inlined_call_operand.vmem [shape: f32[1,48], index: 2, kind: input, shape index: {}]   ;;  %s3546_s3 = inlined_call_operand.vmem [shape: f32[2,32,16], index: 3, kind: input, shape index: {}]   ;;  %s3547_s4 = inlined_call_operand.vmem [shape: f32[3,16,32], index: 4, kind: input, shape index: {}]   ;;  %s3548_s5 = inlined_call_operand.vmem [shape: f32[1,32], index: 5, kind: input, shape index: {}]   ;;  %s3549_s6 = inlined_call_operand.vmem [shape: f32[16,9,32], index: 6, kind: output, shape index: {}]  }
   0x1 LB: > { %s2560_s22 = sadd.s32 4294967295, %s2948_s21   ;;  %p2564_p0 = scmp.ge.s32.totalorder %s2948_s21, 1  ;;  %s2948_s21 = sphi %s2991_s21, %s16_s21  }
   0x2   : > { %p214_p1 = scmp.lt.s32.totalorder %s2948_s21, 3 }
   0x4   : > { %p215_p2 = pnand %p2564_p0, %p214_p1 }
   0x5   : > { %v268_v0 = vld [vmem:[%s3544_s1] sm:$0xff] (!%p215_p2)  ;;  %v269_v1 = vld [vmem:[%s3544_s1 + $0x8] sm:$0xff] (!%p215_p2)  ;;  %v270_v2 = vld [vmem:[%s3544_s1 + $0x10] sm:$0xff] (!%p215_p2)  ;;  %v2950_v3 = vmov (!%p215_p2), 0.0|0.0   ;;  %vm2951_vm0 = vmmov (!%p215_p2), 0   ;;  %v2952_v6 = vmov (!%p215_p2), 0.0  }
   0x6   : > { %218 = sbr.rel (%p215_p2) target bundleno = 2268 (0x8dc), region = 44  ;;  %2839 = vmatprep.subr.bf16.mxu0 (!%p215_p2), %v2950_v3  ;;  %v2840_v4 = vpack.c.bf16 (!%p215_p2), %v269_v1, %v268_v0  ;;  %v271_v5 = vld [vmem:[%s3544_s1 + $0x18] sm:$0xff] (!%p215_p2)  ;;  %2685 = vmatprep.mubr.msk.f32.mxu0 (!%p215_p2), %vm2951_vm0, %v2952_v6  ;;  %s2565_s7 = sshll.u32 (!%p215_p2), %s2560_s22, 3  ;;  %vm288_vm1 = vcmask (!%p215_p2), 1041409   ;;  %vm291_vm2 = vcmask (!%p215_p2), 1042434   ;;  %vm294_vm3 = vcmask (!%p215_p2), 1043459  }
   0x7   : > { %p247_p3 = scmp.lt.s32.totalorder (!%p215_p2), %s2565_s7, 15  ;;  %2845 = vmatprep.subr.bf16.mxu1 (!%p215_p2), %v2950_v3  ;;  %2692 = vmatprep.mubr.msk.f32.mxu1 (!%p215_p2), %vm2951_vm0, %v2952_v6  ;;  %v2843_v7 = vpack.c.bf16 (!%p215_p2), %v271_v5, %v270_v2  ;;  %vm297_vm4 = vcmask (!%p215_p2), 1044484   ;;  %vm300_vm5 = vcmask (!%p215_p2), 1045509   ;;  %vm303_vm6 = vcmask (!%p215_p2), 1046534   ;;  %v394_v30 = vld [vmem:[%s3547_s4] sm:$0xff] (!%p215_p2)  ;;  %v395_v31 = vld [vmem:[%s3547_s4 + $0x8] sm:$0xff] (!%p215_p2) }
   0x8   : > { %2841 = vmatpush3.bf16.msra.mxu0 (!%p215_p2), %v2840_v4  ;;  %vm306_vm7 = vcmask (!%p215_p2), 1047559   ;;  %vm308_vm8 = vcmask (!%p215_p2), 261120   ;;  %v2846_v32 = vpack.c.bf16 (!%p215_p2), %v395_v31, %v394_v30  ;;  %v2571_v33 = vld [vmem:[%s3545_s2] ss:$0 sm:$0xff] (!%p215_p2)  ;;  %v545_v54 = vld [vmem:[%s3546_s3 + $0x8] sm:$0xff] (!%p215_p2)  ;;  %vm403_vm9 = vcmask (!%p215_p2), 130048  }
   0x9   : > { %2842 = vmatprep.subr.bf16.mxu0 (!%p215_p2), %v2950_v3  ;;  %v544_v53 = vld [vmem:[%s3546_s3] sm:$0xff] (!%p215_p2)  ;;  %v546_v61 = vld [vmem:[%s3546_s3 + $0x10] sm:$0xff] (!%p215_p2)  ;;  %v547_v62 = vld [vmem:[%s3546_s3 + $0x18] sm:$0xff] (!%p215_p2)  ;;  %s2953_s27 = smov (!%p215_p2), 112   ;;  %s2954_s28 = smov (!%p215_p2), 96   ;;  %vm535_vm10 = vcmask (!%p215_p2), 253952  }
   0xa   : > { %2847 = vmatpush3.bf16.msra.mxu1 (!%p215_p2), %v2846_v32  ;;  %v3074_v59 = vpack.c.bf16 (!%p215_p2), %v545_v54, %v544_v53  ;;  %v3086_v4 = vpack.c.bf16 (!%p215_p2), %v547_v62, %v546_v61 }
   0xb   : > { %2848 = vmatprep.subr.bf16.mxu1 (!%p215_p2), %v2950_v3 }
   0xc   : > { %2844 = vmatpush3.bf16.msra.mxu0 (!%p215_p2), %v2843_v7 }
   0xd   : > { %s3551_s7 = smov (!%p247_p3, %s2565_s7), 15  ;;  %2854 = vmatprep.subr.bf16.mxu0 %v2950_v3 }
   0xe   : > { %s2603_s8 = sshll.u32 %s3551_s7, 4 }
   0xf   : > { %s3026_s11 = scalar_lea.vmem %s3543_s0, %s2603_s8  ;;  %s3130_s16 = scalar_lea.vmem %s3549_s6, %s2603_s8 }
  0x10   : > { %v260_v8 = vld [vmem:[%s3026_s11] sm:$0x1]  ;;  %v261_v9 = vld [vmem:[%s3026_s11 + $0x10] sm:$0x1]  ;;  %v552_v38 = vld [vmem:[%s3026_s11 + $0x11] sm:$0x1] }
  0x11   : > { %v262_v10 = vld [vmem:[%s3026_s11 + $0x20] sm:$0x1]  ;;  %v263_v11 = vld [vmem:[%s3026_s11 + $0x30] sm:$0x1]  ;;  %v287_v15 = vrot.slane %v261_v9, 7  ;;  %v567_v40 = vrot.slane %v552_v38, 7 }
  0x12   : > { %v264_v12 = vld [vmem:[%s3026_s11 + $0x40] sm:$0x1]  ;;  %v265_v13 = vld [vmem:[%s3026_s11 + $0x50] sm:$0x1]  ;;  %v290_v16 = vrot.slane %v262_v10, 6  ;;  %v293_v18 = vrot.slane %v263_v11, 5 }
  0x13   : > { %v266_v14 = vld [vmem:[%s3026_s11 + $0x60] sm:$0x1]  ;;  %v267_v17 = vld [vmem:[%s3026_s11 + $0x70] sm:$0x1]  ;;  %v296_v19 = vrot.slane %v264_v12, 4  ;;  %v289_v20 = vsel %vm288_vm1, %v287_v15, %v260_v8  ;;  %v299_v21 = vrot.slane %v265_v13, 3 }
  0x14   : > { %v292_v22 = vsel %vm291_vm2, %v290_v16, %v289_v20  ;;  %v302_v23 = vrot.slane %v266_v14, 2  ;;  %v305_v25 = vrot.slane %v267_v17, 1  ;;  %v553_v39 = vld [vmem:[%s3026_s11 + $0x21] sm:$0x1]  ;;  %v554_v44 = vld [vmem:[%s3026_s11 + $0x31] sm:$0x1] }
  0x15   : > { %v295_v24 = vsel %vm294_vm3, %v293_v18, %v292_v22  ;;  %v551_v42 = vld [vmem:[%s3026_s11 + $0x1] sm:$0x1]  ;;  %v569_v45 = vrot.slane %v553_v39, 6  ;;  %v571_v48 = vrot.slane %v554_v44, 5  ;;  %v556_v50 = vld [vmem:[%s3026_s11 + $0x51] sm:$0x1]  ;;  %v482_v18 = vlaneseq }
  0x16   : > { %v298_v26 = vsel %vm297_vm4, %v296_v19, %v295_v24  ;;  %v568_v46 = vsel %vm288_vm1, %v567_v40, %v551_v42  ;;  %v555_v47 = vld [vmem:[%s3026_s11 + $0x41] sm:$0x1]  ;;  %v575_v56 = vrot.slane %v556_v50, 3  ;;  %v558_v63 = vld [vmem:[%s3026_s11 + $0x71] sm:$0x1]  ;;  %v2578_v13 = vld [vmem:[%s3547_s4 + $0x18] sm:$0xff] }
  0x17   : > { %v301_v27 = vsel %vm300_vm5, %v299_v21, %v298_v26  ;;  %v570_v49 = vsel %vm291_vm2, %v569_v45, %v568_v46  ;;  %v573_v51 = vrot.slane %v555_v47, 4  ;;  %v557_v55 = vld [vmem:[%s3026_s11 + $0x61] sm:$0x1]  ;;  %v579_v5 = vrot.slane %v558_v63, 1  ;;  %v2577_v12 = vld [vmem:[%s3547_s4 + $0x10] sm:$0xff] }
  0x18   : > { %v304_v28 = vsel %vm303_vm6, %v302_v23, %v301_v27  ;;  %v572_v52 = vsel %vm294_vm3, %v571_v48, %v570_v49  ;;  %v577_v0 = vrot.slane %v557_v55, 2  ;;  %v3104_v14 = vpack.c.bf16 %v2578_v13, %v2577_v12  ;;  %v798_v15 = vld [vmem:[%s3026_s11 + $0x12] sm:$0x1]  ;;  %v799_v19 = vld [vmem:[%s3026_s11 + $0x22] sm:$0x1] }
  0x19   : > { %v307_v29 = vsel %vm306_vm7, %v305_v25, %v304_v28  ;;  %v574_v57 = vsel %vm297_vm4, %v573_v51, %v572_v52  ;;  %v2955_v16 = vmov 1966171168   ;;  %v813_v20 = vrot.slane %v798_v15, 7  ;;  %v797_v21 = vld [vmem:[%s3026_s11 + $0x2] sm:$0x1] }
  0x1a   : > { %2686 = vmatmul.mubr.msk.f32.vlgmr.msra.gmra.mrb[0].mxu0 %vm308_vm8, %v307_v29  ;;  %v576_v1 = vsel %vm300_vm5, %v575_v56, %v574_v57  ;;  %v480_v17 = vunpack.c.l.s4 %v2955_v16  ;;  %v483_v23 = vshrl.u32 %v482_v18, 7  ;;  %v800_v24 = vld [vmem:[%s3026_s11 + $0x32] sm:$0x1]  ;;  %v815_v25 = vrot.slane %v799_v19, 6  ;;  %v2575_v27 = vld [vmem:[%s3548_s5] ss:$0 sm:$0xff] }
  0x1b   : > { %2710 = vmatprep.mubr.msk.f32.mxu0 %vm2951_vm0, %v2952_v6  ;;  %v578_v7 = vsel %vm303_vm6, %v577_v0, %v576_v1  ;;  %2856 = vmatpush3.bf16.msra.mxu0 %v3104_v14  ;;  %v814_v26 = vsel %vm288_vm1, %v813_v20, %v797_v21  ;;  %v801_v29 = vld [vmem:[%s3026_s11 + $0x42] sm:$0x1]  ;;  %v817_v30 = vrot.slane %v800_v24, 5  ;;  %v802_v38 = vld [vmem:[%s3026_s11 + $0x52] sm:$0x1] }
  0x1c   : > { %v580_v8 = vsel %vm306_vm7, %v579_v5, %v578_v7  ;;  %2857 = vmatprep.subr.bf16.mxu0 %v2950_v3  ;;  %v481_v22 = vunpack.c.0.s8 %v480_v17  ;;  %v816_v32 = vsel %vm291_vm2, %v815_v25, %v814_v26  ;;  %v821_v45 = vrot.slane %v802_v38, 3  ;;  %v1040_v1 = vld [vmem:[%s3026_s11 + $0x13] sm:$0x1]  ;;  %v1039_v7 = vld [vmem:[%s3026_s11 + $0x3] sm:$0x1] }
  0x1d   : > { %v818_v39 = vsel %vm294_vm3, %v817_v30, %v816_v32  ;;  %v1055_v5 = vrot.slane %v1040_v1, 7  ;;  %v1043_v12 = vld [vmem:[%s3026_s11 + $0x43] sm:$0x1]  ;;  %v1044_v21 = vld [vmem:[%s3026_s11 + $0x53] sm:$0x1] }
  0x1e   : > { %v3118_v28 = vsub.s32 %v481_v22, %v483_v23  ;;  %v1061_v22 = vrot.slane %v1043_v12, 4  ;;  %v1063_v30 = vrot.slane %v1044_v21, 3  ;;  %v2587_v21 = vld [vmem:[%s3546_s3 + $0x30] sm:$0xff] }
  0xed   : > { %v377_v34 = vpop.f32.mrb[0].mxu0 }
  0xee   : > { %v378_v35 = vadd.f32 %v2571_v33, %v377_v34  ;;  %v2687_v36 = vpop.f32.mrb[1].mxu0 }
  0xf0   : > { %v2573_v37 = vmul.f32 -1.442695, %v378_v35 }
  0xf2   : > { %2934 = vpow2.f32 %v2573_v37 }
  0xfc   : > { %v2935_v41 = vpop.eup %2934 }
  0xfd   : > { %v384_v43 = vadd.f32 1.0, %v2935_v41 }
  0xff   : > { %2936 = vrcp.f32 %v384_v43  ;;  %v803_v43 = vld [vmem:[%s3026_s11 + $0x62] sm:$0x1] }
 0x100   : > { %v823_v52 = vrot.slane %v803_v43, 2 }
 0x109   : > { %v2937_v58 = vpop.eup %2936 }
 0x10a   : > { %v387_v60 = vmul.f32 %v2937_v58, %v378_v35  ;;  %v819_v35 = vrot.slane %v801_v29, 4  ;;  %v804_v58 = vld [vmem:[%s3026_s11 + $0x72] sm:$0x1]  ;;  %v1045_v29 = vld [vmem:[%s3026_s11 + $0x63] sm:$0x1] }
 0x10b   : > { %v825_v62 = vrot.slane %v804_v58, 1 }
 0x10c   : > { %v2574_v2 = vmul.f32 -1.442695, %v387_v60  ;;  %2693 = vmatmul.mubr.msk.f32.vlgmr.msra.gmra.mrb[0].mxu1 %vm403_vm9, %v387_v60  ;;  %v820_v44 = vsel %vm297_vm4, %v819_v35, %v818_v39  ;;  %v1046_v39 = vld [vmem:[%s3026_s11 + $0x73] sm:$0x1] }
 0x10d   : > { %2850 = vmatpush3.bf16.msra.mxu1 %v3074_v59  ;;  %2703 = vmatprep.mubr.msk.f32.mxu1 %vm2951_vm0, %v2952_v6  ;;  %v822_v60 = vsel %vm300_vm5, %v821_v45, %v820_v44  ;;  %v1291_v45 = vld [vmem:[%s3026_s11 + $0x24] sm:$0x1] }
 0x10e   : > { %2938 = vpow2.f32 %v2574_v2  ;;  %2851 = vmatprep.subr.bf16.mxu1 %v2950_v3  ;;  %v824_v63 = vsel %vm303_vm6, %v823_v52, %v822_v60  ;;  %v1041_v2 = vld [vmem:[%s3026_s11 + $0x23] sm:$0x1] }
 0x10f   : > { %v826_v0 = vsel %vm306_vm7, %v825_v62, %v824_v63  ;;  %v1294_v62 = vld [vmem:[%s3026_s11 + $0x54] sm:$0x1] }
 0x111   : > { %2853 = vmatpush3.bf16.msra.mxu1 %v3086_v4 }
 0x112   : > { %2863 = vmatprep.subr.bf16.mxu1 %v2950_v3 }
 0x114   : > { %2704 = vmatmul.mubr.msk.f32.vlgmr.msra.gmra.mrb[2].mxu1 %vm308_vm8, %v580_v8  ;;  %v1042_v8 = vld [vmem:[%s3026_s11 + $0x33] sm:$0x1] }
 0x115   : > { %2728 = vmatprep.mubr.msk.f32.mxu1 %vm2951_vm0, %v2952_v6  ;;  %2865 = vmatpush3.bf16.msra.mxu1 %v3104_v14  ;;  %v1059_v13 = vrot.slane %v1042_v8, 5  ;;  %v2585_v8 = vld [vmem:[%s3546_s3 + $0x20] sm:$0xff] }
 0x116   : > { %2866 = vmatprep.subr.bf16.mxu1 %v2950_v3 }
 0x118   : > { %v2939_v9 = vpop.eup %2938 }
 0x119   : > { %v391_v10 = vadd.f32 1.0, %v2939_v9  ;;  %v1057_v9 = vrot.slane %v1041_v2, 6 }
 0x11b   : > { %2940 = vrcp.f32 %v391_v10  ;;  %v1056_v10 = vsel %vm288_vm1, %v1055_v5, %v1039_v7 }
 0x11c   : > { %v1058_v17 = vsel %vm291_vm2, %v1057_v9, %v1056_v10  ;;  %v2586_v9 = vld [vmem:[%s3546_s3 + $0x28] sm:$0xff]  ;;  %v1295_v10 = vld [vmem:[%s3026_s11 + $0x64] sm:$0x1] }
 0x11d   : > { %v1060_v23 = vsel %vm294_vm3, %v1059_v13, %v1058_v17  ;;  %v3253_v17 = vpack.c.bf16 %v2586_v9, %v2585_v8 }
 0x125   : > { %v2941_v11 = vpop.eup %2940 }
 0x126   : > { %654 = vrot.lane.b32.xlu0 %v2941_v11, %s2953_s27 }
 0x12a   : > { %1391 = vrot.lane.b32.xlu0 %v2941_v11, %s2954_s28 }
 0x198   : > { %v3140_v50 = vpop.permute.xlu0 %654 }
 0x1df   : > { %v473_v31 = vpop.f32.mrb[0].mxu1 }
 0x1e0   : > { %v474_v33 = vadd.f32 %v2575_v27, %v473_v31  ;;  %v2694_v34 = vpop.f32.mrb[1].mxu1 }
 0x1e1   : > { %v1062_v34 = vsel %vm297_vm4, %v1061_v22, %v1060_v23  ;;  %v2588_v22 = vld [vmem:[%s3546_s3 + $0x38] sm:$0xff]  ;;  %v1296_v23 = vld [vmem:[%s3026_s11 + $0x74] sm:$0x1] }
 0x1e2   : > { %v478_v36 = vcombine.high %v474_v33, %v474_v33  ;;  %v485_v37 = vrot.slane %v474_v33, %v3118_v28 }
 0x1e4   : > { %v492_v40 = vrot.slane %v478_v36, %v3118_v28  ;;  %v493_v41 = vcombine.high %v485_v37, %v485_v37  ;;  %v501_v42 = vrot.slane %v485_v37, %v3118_v28 }
 0x1e6   : > { %v494_v46 = vcombine.high %v492_v40, %v492_v40  ;;  %v508_v47 = vrot.slane %v492_v40, %v3118_v28  ;;  %v515_v48 = vrot.slane %v493_v41, %v3118_v28  ;;  %v523_v49 = vcombine.high %v501_v42, %v501_v42  ;;  %536 = vst.msk [vmem:[%s3130_s16] sm:$0x1] %vm535_vm10, %v501_v42 }
 0x1e7   : > { %v649_v51 = vpop.f32.mrb[2].mxu1  ;;  %v1065_v40 = vrot.slane %v1045_v29, 2  ;;  %v1064_v41 = vsel %vm300_vm5, %v1063_v30, %v1062_v34  ;;  %v1067_v42 = vrot.slane %v1046_v39, 1  ;;  %v2589_v30 = vld [vmem:[%s3547_s4 + $0x20] sm:$0xff] }
 0x1e8   : > { %v522_v53 = vrot.slane %v494_v46, %v3118_v28  ;;  %v524_v54 = vcombine.high %v508_v47, %v508_v47  ;;  %v525_v55 = vcombine.high %v515_v48, %v515_v48  ;;  %537 = vst.msk [vmem:[%s3130_s16 + $0x10] sm:$0x1] %vm535_vm10, %v515_v48  ;;  %538 = vst.msk [vmem:[%s3130_s16 + $0x20] sm:$0x1] %vm535_vm10, %v523_v49  ;;  %v2705_v57 = vpop.f32.mrb[3].mxu1  ;;  %v1307_v49 = vrot.slane %v1291_v45, 6 }
 0x1e9   : > { %540 = vst.msk [vmem:[%s3130_s16 + $0x40] sm:$0x1] %vm535_vm10, %v508_v47  ;;  %v657_v56 = vmul.f32 %v3140_v50, %v649_v51  ;;  %v1066_v43 = vsel %vm303_vm6, %v1065_v40, %v1064_v41  ;;  %v1289_v47 = vld [vmem:[%s3026_s11 + $0x4] sm:$0x1]  ;;  %v1292_v48 = vld [vmem:[%s3026_s11 + $0x34] sm:$0x1] }
 0x1ea   : > { %v526_v61 = vcombine.high %v522_v53, %v522_v53  ;;  %539 = vst.msk [vmem:[%s3130_s16 + $0x30] sm:$0x1] %vm535_vm10, %v525_v55  ;;  %541 = vst.msk [vmem:[%s3130_s16 + $0x50] sm:$0x1] %vm535_vm10, %v522_v53  ;;  %v1068_v44 = vsel %vm306_vm7, %v1067_v42, %v1066_v43  ;;  %v1309_v53 = vrot.slane %v1292_v48, 5 }
 0x1eb   : > { %542 = vst.msk [vmem:[%s3130_s16 + $0x60] sm:$0x1] %vm535_vm10, %v524_v54  ;;  %2711 = vmatmul.mubr.msk.f32.vlgmr.msra.gmra.mrb[2].mxu0 %vm403_vm9, %v657_v56  ;;  %v1536_v34 = vld [vmem:[%s3026_s11 + $0x25] sm:$0x1] }
 0x1ec   : > { %2859 = vmatpush3.bf16.msra.mxu0 %v3074_v59  ;;  %2721 = vmatprep.mubr.msk.f32.mxu0 %vm2951_vm0, %v2952_v6  ;;  %543 = vst.msk [vmem:[%s3130_s16 + $0x70] sm:$0x1] %vm535_vm10, %v526_v61  ;;  %v1538_v41 = vld [vmem:[%s3026_s11 + $0x45] sm:$0x1] }
 0x1ed   : > { %2860 = vmatprep.subr.bf16.mxu0 %v2950_v3 }
 0x1f0   : > { %2862 = vmatpush3.bf16.msra.mxu0 %v3086_v4 }
 0x1f1   : > { %2872 = vmatprep.subr.bf16.mxu0 %v2950_v3 }
 0x1f3   : > { %2722 = vmatmul.mubr.msk.f32.vlgmr.msra.gmra.mrb[4].mxu0 %vm308_vm8, %v826_v0 }
 0x1f4   : > { %2874 = vmatpush3.bf16.msra.mxu0 %v3104_v14  ;;  %2746 = vmatprep.mubr.msk.f32.mxu0 %vm2951_vm0, %v2952_v6 }
 0x1f5   : > { %2875 = vmatprep.subr.bf16.mxu0 %v2950_v3 }
 0x2be   : > { %v727_v11 = vpop.f32.mrb[2].mxu0 }
 0x2bf   : > { %v732_v14 = vcombine.high %v727_v11, %v727_v11  ;;  %v739_v15 = vrot.slane %v727_v11, %v3118_v28  ;;  %v2712_v16 = vpop.f32.mrb[3].mxu0  ;;  %v1313_v11 = vrot.slane %v1294_v62, 3 }
 0x2c1   : > { %v746_v18 = vrot.slane %v732_v14, %v3118_v28  ;;  %v747_v19 = vcombine.high %v739_v15, %v739_v15  ;;  %v755_v20 = vrot.slane %v739_v15, %v3118_v28 }
 0x2c3   : > { %v748_v24 = vcombine.high %v746_v18, %v746_v18  ;;  %v762_v25 = vrot.slane %v746_v18, %v3118_v28  ;;  %v769_v26 = vrot.slane %v747_v19, %v3118_v28  ;;  %v777_v27 = vcombine.high %v755_v20, %v755_v20  ;;  %789 = vst.msk [vmem:[%s3130_s16 + $0x1] sm:$0x1] %vm535_vm10, %v755_v20 }
 0x2c5   : > { %v776_v31 = vrot.slane %v748_v24, %v3118_v28  ;;  %v778_v32 = vcombine.high %v762_v25, %v762_v25  ;;  %v779_v33 = vcombine.high %v769_v26, %v769_v26  ;;  %790 = vst.msk [vmem:[%s3130_s16 + $0x11] sm:$0x1] %vm535_vm10, %v769_v26  ;;  %791 = vst.msk [vmem:[%s3130_s16 + $0x21] sm:$0x1] %vm535_vm10, %v777_v27  ;;  %v1315_v24 = vrot.slane %v1295_v10, 2 }
 0x2c6   : > { %793 = vst.msk [vmem:[%s3130_s16 + $0x41] sm:$0x1] %vm535_vm10, %v762_v25  ;;  %v895_v35 = vpop.f32.mrb[4].mxu0  ;;  %v1317_v26 = vrot.slane %v1296_v23, 1 }
 0x2c7   : > { %v780_v36 = vcombine.high %v776_v31, %v776_v31  ;;  %792 = vst.msk [vmem:[%s3130_s16 + $0x31] sm:$0x1] %vm535_vm10, %v779_v33  ;;  %794 = vst.msk [vmem:[%s3130_s16 + $0x51] sm:$0x1] %vm535_vm10, %v776_v31  ;;  %v899_v37 = vmul.f32 %v895_v35, %v3140_v50  ;;  %v2723_v38 = vpop.f32.mrb[5].mxu0  ;;  %v2590_v31 = vld [vmem:[%s3547_s4 + $0x28] sm:$0xff] }
 0x2c8   : > { %795 = vst.msk [vmem:[%s3130_s16 + $0x61] sm:$0x1] %vm535_vm10, %v778_v32  ;;  %v3292_v32 = vpack.c.bf16 %v2590_v31, %v2589_v30  ;;  %v1535_v33 = vld [vmem:[%s3026_s11 + $0x15] sm:$0x1]  ;;  %v1552_v38 = vrot.slane %v1536_v34, 6 }
 0x2c9   : > { %796 = vst.msk [vmem:[%s3130_s16 + $0x71] sm:$0x1] %vm535_vm10, %v780_v36  ;;  %2729 = vmatmul.mubr.msk.f32.vlgmr.msra.gmra.mrb[4].mxu1 %vm403_vm9, %v899_v37  ;;  %v1550_v35 = vrot.slane %v1535_v33, 7  ;;  %v1534_v36 = vld [vmem:[%s3026_s11 + $0x5] sm:$0x1] }
 0x2ca   : > { %2868 = vmatpush3.bf16.msra.mxu1 %v3074_v59  ;;  %2739 = vmatprep.mubr.msk.f32.mxu1 %vm2951_vm0, %v2952_v6  ;;  %v1290_v59 = vld [vmem:[%s3026_s11 + $0x14] sm:$0x1]  ;;  %v1537_v37 = vld [vmem:[%s3026_s11 + $0x35] sm:$0x1]  ;;  %v1781_v33 = vld [vmem:[%s3026_s11 + $0x56] sm:$0x1] }
 0x2cb   : > { %2869 = vmatprep.subr.bf16.mxu1 %v2950_v3  ;;  %v1305_v46 = vrot.slane %v1290_v59, 7  ;;  %v1551_v39 = vsel %vm288_vm1, %v1550_v35, %v1534_v36  ;;  %v1554_v42 = vrot.slane %v1537_v37, 5 }
 0x2cc   : > { %v1553_v45 = vsel %vm291_vm2, %v1552_v38, %v1551_v39 }
 0x2cd   : > { %v1306_v51 = vsel %vm288_vm1, %v1305_v46, %v1289_v47 }
 0x2ce   : > { %2871 = vmatpush3.bf16.msra.mxu1 %v3086_v4  ;;  %v1293_v4 = vld [vmem:[%s3026_s11 + $0x44] sm:$0x1]  ;;  %v1308_v57 = vsel %vm291_vm2, %v1307_v49, %v1306_v51  ;;  %v1539_v49 = vld [vmem:[%s3026_s11 + $0x55] sm:$0x1]  ;;  %v1556_v51 = vrot.slane %v1538_v41, 4  ;;  %v1800_v41 = vrot.slane %v1781_v33, 3 }
 0x2cf   : > { %2881 = vmatprep.subr.bf16.mxu1 %v2950_v3  ;;  %v1311_v63 = vrot.slane %v1293_v4, 4  ;;  %v1310_v0 = vsel %vm294_vm3, %v1309_v53, %v1308_v57  ;;  %v1558_v57 = vrot.slane %v1539_v49, 3  ;;  %v1783_v49 = vld [vmem:[%s3026_s11 + $0x76] sm:$0x1]  ;;  %v2025_v33 = vld [vmem:[%s3026_s11 + $0x77] sm:$0x1] }
 0x2d1   : > { %2740 = vmatmul.mubr.msk.f32.vlgmr.msra.gmra.mrb[6].mxu1 %vm308_vm8, %v1068_v44  ;;  %v1312_v15 = vsel %vm297_vm4, %v1311_v63, %v1310_v0  ;;  %v3323_v63 = vpop.permute.xlu0 %1391 }
 0x2d2   : > { %2764 = vmatprep.mubr.msk.f32.mxu1 %vm2951_vm0, %v2952_v6  ;;  %v1314_v25 = vsel %vm300_vm5, %v1313_v11, %v1312_v15  ;;  %2883 = vmatpush3.bf16.msra.mxu1 %v3292_v32 }
 0x2d3   : > { %v1316_v27 = vsel %vm303_vm6, %v1315_v24, %v1314_v25  ;;  %2884 = vmatprep.subr.bf16.mxu1 %v2950_v3 }
 0x2d4   : > { %v1318_v29 = vsel %vm306_vm7, %v1317_v26, %v1316_v27 }
 0x39c   : > { %v969_v52 = vpop.f32.mrb[4].mxu1 }
 0x39d   : > { %v974_v54 = vcombine.high %v969_v52, %v969_v52  ;;  %v981_v55 = vrot.slane %v969_v52, %v3118_v28  ;;  %v2730_v56 = vpop.f32.mrb[5].mxu1  ;;  %v1555_v52 = vsel %vm294_vm3, %v1554_v42, %v1553_v45 }
 0x39e   : > { %v1540_v56 = vld [vmem:[%s3026_s11 + $0x65] sm:$0x1]  ;;  %v1557_v62 = vsel %vm297_vm4, %v1556_v51, %v1555_v52 }
 0x39f   : > { %v988_v58 = vrot.slane %v974_v54, %v3118_v28  ;;  %v989_v60 = vcombine.high %v981_v55, %v981_v55  ;;  %v997_v61 = vrot.slane %v981_v55, %v3118_v28  ;;  %v1560_v8 = vrot.slane %v1540_v56, 2  ;;  %v2020_v56 = vld [vmem:[%s3026_s11 + $0x27] sm:$0x1] }
 0x3a0   : > { %v1559_v9 = vsel %vm300_vm5, %v1558_v57, %v1557_v62 }
 0x3a1   : > { %v990_v1 = vcombine.high %v988_v58, %v988_v58  ;;  %v1004_v2 = vrot.slane %v988_v58, %v3118_v28  ;;  %v1011_v5 = vrot.slane %v989_v60, %v3118_v28  ;;  %v1019_v7 = vcombine.high %v997_v61, %v997_v61  ;;  %1031 = vst.msk [vmem:[%s3130_s16 + $0x2] sm:$0x1] %vm535_vm10, %v997_v61 }
 0x3a2   : > { %v1561_v11 = vsel %vm303_vm6, %v1560_v8, %v1559_v9 }
 0x3a3   : > { %v1018_v12 = vrot.slane %v990_v1, %v3118_v28  ;;  %v1020_v13 = vcombine.high %v1004_v2, %v1004_v2  ;;  %v1021_v14 = vcombine.high %v1011_v5, %v1011_v5  ;;  %1032 = vst.msk [vmem:[%s3130_s16 + $0x12] sm:$0x1] %vm535_vm10, %v1011_v5  ;;  %1033 = vst.msk [vmem:[%s3130_s16 + $0x22] sm:$0x1] %vm535_vm10, %v1019_v7  ;;  %v1541_v7 = vld [vmem:[%s3026_s11 + $0x75] sm:$0x1] }
 0x3a4   : > { %1035 = vst.msk [vmem:[%s3130_s16 + $0x42] sm:$0x1] %vm535_vm10, %v1004_v2  ;;  %v1137_v16 = vpop.f32.mrb[6].mxu1  ;;  %v1562_v10 = vrot.slane %v1541_v7, 1 }
 0x3a5   : > { %v1022_v18 = vcombine.high %v1018_v12, %v1018_v12  ;;  %1034 = vst.msk [vmem:[%s3130_s16 + $0x32] sm:$0x1] %vm535_vm10, %v1021_v14  ;;  %1036 = vst.msk [vmem:[%s3130_s16 + $0x52] sm:$0x1] %vm535_vm10, %v1018_v12  ;;  %v1141_v19 = vmul.f32 %v1137_v16, %v3140_v50  ;;  %v2741_v20 = vpop.f32.mrb[7].mxu1  ;;  %v3274_v50 = vpack.c.bf16 %v2588_v22, %v2587_v21 }
 0x3a6   : > { %1037 = vst.msk [vmem:[%s3130_s16 + $0x62] sm:$0x1] %vm535_vm10, %v1020_v13  ;;  %v1563_v12 = vsel %vm306_vm7, %v1562_v10, %v1561_v11  ;;  %v1777_v13 = vld [vmem:[%s3026_s11 + $0x16] sm:$0x1]  ;;  %v1778_v14 = vld [vmem:[%s3026_s11 + $0x26] sm:$0x1] }
 0x3a7   : > { %1038 = vst.msk [vmem:[%s3130_s16 + $0x72] sm:$0x1] %vm535_vm10, %v1022_v18  ;;  %2747 = vmatmul.mubr.msk.f32.vlgmr.msra.gmra.mrb[6].mxu0 %vm403_vm9, %v1141_v19  ;;  %v1792_v15 = vrot.slane %v1777_v13, 7  ;;  %v1776_v16 = vld [vmem:[%s3026_s11 + $0x6] sm:$0x1]  ;;  %v1794_v19 = vrot.slane %v1778_v14, 6 }
 0x3a8   : > { %2877 = vmatpush3.bf16.msra.mxu0 %v3253_v17  ;;  %2757 = vmatprep.mubr.msk.f32.mxu0 %vm2951_vm0, %v2952_v6  ;;  %v1779_v18 = vld [vmem:[%s3026_s11 + $0x36] sm:$0x1]  ;;  %v1780_v22 = vld [vmem:[%s3026_s11 + $0x46] sm:$0x1]  ;;  %v2023_v13 = vld [vmem:[%s3026_s11 + $0x57] sm:$0x1] }
 0x3a9   : > { %2878 = vmatprep.subr.bf16.mxu0 %v2950_v3  ;;  %v1793_v20 = vsel %vm288_vm1, %v1792_v15, %v1776_v16  ;;  %v1796_v23 = vrot.slane %v1779_v18, 5  ;;  %v1798_v34 = vrot.slane %v1780_v22, 4  ;;  %v2042_v22 = vrot.slane %v2023_v13, 3 }
 0x3aa   : > { %v1795_v27 = vsel %vm291_vm2, %v1794_v19, %v1793_v20 }
 0x3ab   : > { %v1797_v35 = vsel %vm294_vm3, %v1796_v23, %v1795_v27 }
 0x3ac   : > { %2880 = vmatpush3.bf16.msra.mxu0 %v3274_v50 }
 0x3ad   : > { %2890 = vmatprep.subr.bf16.mxu0 %v2950_v3 }
 0x3af   : > { %2758 = vmatmul.mubr.msk.f32.vlgmr.msra.gmra.mrb[8].mxu0 %vm308_vm8, %v1318_v29 }
 0x3b0   : > { %2782 = vmatprep.mubr.msk.f32.mxu0 %vm2951_vm0, %v2952_v6  ;;  %2892 = vmatpush3.bf16.msra.mxu0 %v3292_v32 }
 0x3b1   : > { %2893 = vmatprep.subr.bf16.mxu0 %v2950_v3 }
 0x47a   : > { %v1211_v40 = vpop.f32.mrb[6].mxu0 }
 0x47b   : > { %v1216_v43 = vcombine.high %v1211_v40, %v1211_v40  ;;  %v1223_v44 = vrot.slane %v1211_v40, %v3118_v28  ;;  %v2748_v59 = vpop.f32.mrb[7].mxu0  ;;  %v1782_v40 = vld [vmem:[%s3026_s11 + $0x66] sm:$0x1] }
 0x47c   : > { %v1799_v59 = vsel %vm297_vm4, %v1798_v34, %v1797_v35  ;;  %v1802_v51 = vrot.slane %v1782_v40, 2  ;;  %v2262_v40 = vld [vmem:[%s3026_s11 + $0x28] sm:$0x1] }
 0x47d   : > { %v1230_v46 = vrot.slane %v1216_v43, %v3118_v28  ;;  %v1231_v47 = vcombine.high %v1223_v44, %v1223_v44  ;;  %v1239_v48 = vrot.slane %v1223_v44, %v3118_v28  ;;  %v1801_v52 = vsel %vm300_vm5, %v1800_v41, %v1799_v59 }
 0x47f   : > { %v1232_v4 = vcombine.high %v1230_v46, %v1230_v46  ;;  %v1246_v53 = vrot.slane %v1230_v46, %v3118_v28  ;;  %v1253_v54 = vrot.slane %v1231_v47, %v3118_v28  ;;  %v1261_v55 = vcombine.high %v1239_v48, %v1239_v48  ;;  %1273 = vst.msk [vmem:[%s3130_s16 + $0x3] sm:$0x1] %vm535_vm10, %v1239_v48 }
 0x481   : > { %v1260_v58 = vrot.slane %v1232_v4, %v3118_v28  ;;  %v1262_v60 = vcombine.high %v1246_v53, %v1246_v53  ;;  %v1263_v61 = vcombine.high %v1253_v54, %v1253_v54  ;;  %1274 = vst.msk [vmem:[%s3130_s16 + $0x13] sm:$0x1] %vm535_vm10, %v1253_v54  ;;  %1275 = vst.msk [vmem:[%s3130_s16 + $0x23] sm:$0x1] %vm535_vm10, %v1261_v55  ;;  %v1804_v4 = vrot.slane %v1783_v49, 1 }
 0x482   : > { %1277 = vst.msk [vmem:[%s3130_s16 + $0x43] sm:$0x1] %vm535_vm10, %v1246_v53  ;;  %v1387_v0 = vpop.f32.mrb[8].mxu0  ;;  %v1803_v53 = vsel %vm303_vm6, %v1802_v51, %v1801_v52  ;;  %v2019_v55 = vld [vmem:[%s3026_s11 + $0x17] sm:$0x1] }
 0x483   : > { %v1264_v1 = vcombine.high %v1260_v58, %v1260_v58  ;;  %1276 = vst.msk [vmem:[%s3130_s16 + $0x33] sm:$0x1] %vm535_vm10, %v1263_v61  ;;  %1278 = vst.msk [vmem:[%s3130_s16 + $0x53] sm:$0x1] %vm535_vm10, %v1260_v58  ;;  %v1394_v2 = vmul.f32 %v3323_v63, %v1387_v0  ;;  %v2759_v5 = vpop.f32.mrb[9].mxu0  ;;  %v1805_v54 = vsel %vm306_vm7, %v1804_v4, %v1803_v53  ;;  %v2034_v57 = vrot.slane %v2019_v55, 7 }
 0x484   : > { %1279 = vst.msk [vmem:[%s3130_s16 + $0x63] sm:$0x1] %vm535_vm10, %v1262_v60  ;;  %v2018_v58 = vld [vmem:[%s3026_s11 + $0x7] sm:$0x1]  ;;  %v2021_v60 = vld [vmem:[%s3026_s11 + $0x37] sm:$0x1] }
 0x485   : > { %1280 = vst.msk [vmem:[%s3130_s16 + $0x73] sm:$0x1] %vm535_vm10, %v1264_v1  ;;  %2765 = vmatmul.mubr.msk.f32.vlgmr.msra.gmra.mrb[8].mxu1 %vm403_vm9, %v1394_v2  ;;  %v2036_v61 = vrot.slane %v2020_v56, 6  ;;  %v2035_v62 = vsel %vm288_vm1, %v2034_v57, %v2018_v58  ;;  %v2022_v1 = vld [vmem:[%s3026_s11 + $0x47] sm:$0x1]  ;;  %v2038_v2 = vrot.slane %v2021_v60, 5 }
 0x486   : > { %2886 = vmatpush3.bf16.msra.mxu1 %v3253_v17  ;;  %2775 = vmatprep.mubr.msk.f32.mxu1 %vm2951_vm0, %v2952_v6  ;;  %v2040_v14 = vrot.slane %v2022_v1, 4 }
 0x487   : > { %2887 = vmatprep.subr.bf16.mxu1 %v2950_v3  ;;  %v2037_v9 = vsel %vm291_vm2, %v2036_v61, %v2035_v62  ;;  %v2266_v62 = vld [vmem:[%s3026_s11 + $0x68] sm:$0x1] }
 0x488   : > { %v2039_v15 = vsel %vm294_vm3, %v2038_v2, %v2037_v9  ;;  %v2286_v13 = vrot.slane %v2266_v62, 2 }
 0x48a   : > { %2889 = vmatpush3.bf16.msra.mxu1 %v3274_v50 }
 0x48b   : > { %2899 = vmatprep.subr.bf16.mxu1 %v2950_v3 }
 0x48d   : > { %2776 = vmatmul.mubr.msk.f32.vlgmr.msra.gmra.mrb[10].mxu1 %vm308_vm8, %v1563_v12 }
 0x48e   : > { %2901 = vmatpush3.bf16.msra.mxu1 %v3292_v32  ;;  %2800 = vmatprep.mubr.msk.f32.mxu1 %vm2951_vm0, %v2952_v6 }
 0x48f   : > { %2902 = vmatprep.subr.bf16.mxu1 %v2950_v3 }
 0x558   : > { %v1464_v21 = vpop.f32.mrb[8].mxu1 }
 0x559   : > { %v1469_v24 = vcombine.high %v1464_v21, %v1464_v21  ;;  %v1476_v25 = vrot.slane %v1464_v21, %v3118_v28  ;;  %v2766_v26 = vpop.f32.mrb[9].mxu1  ;;  %v2024_v21 = vld [vmem:[%s3026_s11 + $0x67] sm:$0x1] }
 0x55a   : > { %v2041_v26 = vsel %vm297_vm4, %v2040_v14, %v2039_v15  ;;  %v2044_v34 = vrot.slane %v2024_v21, 2 }
 0x55b   : > { %v1483_v29 = vrot.slane %v1469_v24, %v3118_v28  ;;  %v1484_v30 = vcombine.high %v1476_v25, %v1476_v25  ;;  %v1492_v31 = vrot.slane %v1476_v25, %v3118_v28  ;;  %v2043_v35 = vsel %vm300_vm5, %v2042_v22, %v2041_v26 }
 0x55d   : > { %v1485_v36 = vcombine.high %v1483_v29, %v1483_v29  ;;  %v1499_v37 = vrot.slane %v1483_v29, %v3118_v28  ;;  %v1506_v38 = vrot.slane %v1484_v30, %v3118_v28  ;;  %v1514_v39 = vcombine.high %v1492_v31, %v1492_v31  ;;  %1526 = vst.msk [vmem:[%s3130_s16 + $0x4] sm:$0x1] %vm535_vm10, %v1492_v31 }
 0x55f   : > { %v1513_v42 = vrot.slane %v1485_v36, %v3118_v28  ;;  %v1515_v43 = vcombine.high %v1499_v37, %v1499_v37  ;;  %v1516_v44 = vcombine.high %v1506_v38, %v1506_v38  ;;  %1527 = vst.msk [vmem:[%s3130_s16 + $0x14] sm:$0x1] %vm535_vm10, %v1506_v38  ;;  %1528 = vst.msk [vmem:[%s3130_s16 + $0x24] sm:$0x1] %vm535_vm10, %v1514_v39  ;;  %v2046_v36 = vrot.slane %v2025_v33, 1 }
 0x560   : > { %1530 = vst.msk [vmem:[%s3130_s16 + $0x44] sm:$0x1] %vm535_vm10, %v1499_v37  ;;  %v1632_v45 = vpop.f32.mrb[10].mxu1  ;;  %v2045_v37 = vsel %vm303_vm6, %v2044_v34, %v2043_v35  ;;  %v2261_v39 = vld [vmem:[%s3026_s11 + $0x18] sm:$0x1] }
 0x561   : > { %v1517_v46 = vcombine.high %v1513_v42, %v1513_v42  ;;  %1529 = vst.msk [vmem:[%s3130_s16 + $0x34] sm:$0x1] %vm535_vm10, %v1516_v44  ;;  %1531 = vst.msk [vmem:[%s3130_s16 + $0x54] sm:$0x1] %vm535_vm10, %v1513_v42  ;;  %v1636_v47 = vmul.f32 %v1632_v45, %v3323_v63  ;;  %v2777_v48 = vpop.f32.mrb[11].mxu1  ;;  %v2047_v38 = vsel %vm306_vm7, %v2046_v36, %v2045_v37  ;;  %v2276_v41 = vrot.slane %v2261_v39, 7 }
 0x562   : > { %1532 = vst.msk [vmem:[%s3130_s16 + $0x64] sm:$0x1] %vm535_vm10, %v1515_v43  ;;  %v2260_v42 = vld [vmem:[%s3026_s11 + $0x8] sm:$0x1]  ;;  %v2263_v43 = vld [vmem:[%s3026_s11 + $0x38] sm:$0x1] }
 0x563   : > { %1533 = vst.msk [vmem:[%s3130_s16 + $0x74] sm:$0x1] %vm535_vm10, %v1517_v46  ;;  %2783 = vmatmul.mubr.msk.f32.vlgmr.msra.gmra.mrb[10].mxu0 %vm403_vm9, %v1636_v47  ;;  %v2278_v44 = vrot.slane %v2262_v40, 6  ;;  %v2277_v59 = vsel %vm288_vm1, %v2276_v41, %v2260_v42  ;;  %v2264_v46 = vld [vmem:[%s3026_s11 + $0x48] sm:$0x1]  ;;  %v2280_v47 = vrot.slane %v2263_v43, 5 }
 0x564   : > { %2895 = vmatpush3.bf16.msra.mxu0 %v3253_v17  ;;  %2793 = vmatprep.mubr.msk.f32.mxu0 %vm2951_vm0, %v2952_v6  ;;  %v2282_v55 = vrot.slane %v2264_v46, 4 }
 0x565   : > { %2896 = vmatprep.subr.bf16.mxu0 %v2950_v3  ;;  %v2279_v51 = vsel %vm291_vm2, %v2278_v44, %v2277_v59 }
 0x566   : > { %v2281_v56 = vsel %vm294_vm3, %v2280_v47, %v2279_v51 }
 0x568   : > { %2898 = vmatpush3.bf16.msra.mxu0 %v3274_v50 }
 0x569   : > { %2908 = vmatprep.subr.bf16.mxu0 %v2950_v3 }
 0x56b   : > { %2794 = vmatmul.mubr.msk.f32.vlgmr.msra.gmra.mrb[12].mxu0 %vm308_vm8, %v1805_v54  ;;  %v2265_v54 = vld [vmem:[%s3026_s11 + $0x58] sm:$0x1] }
 0x56c   : > { %2910 = vmatpush3.bf16.msra.mxu0 %v3292_v32  ;;  %2818 = vmatprep.mubr.msk.f32.mxu0 %vm2951_vm0, %v2952_v6 }
 0x56d   : > { %2911 = vmatprep.subr.bf16.mxu0 %v2950_v3 }
 0x636   : > { %v1706_v0 = vpop.f32.mrb[10].mxu0 }
 0x637   : > { %v1711_v5 = vcombine.high %v1706_v0, %v1706_v0  ;;  %v1718_v7 = vrot.slane %v1706_v0, %v3118_v28  ;;  %v2784_v8 = vpop.f32.mrb[11].mxu0  ;;  %v2284_v0 = vrot.slane %v2265_v54, 3 }
 0x639   : > { %v1725_v10 = vrot.slane %v1711_v5, %v3118_v28  ;;  %v1726_v11 = vcombine.high %v1718_v7, %v1718_v7  ;;  %v1734_v12 = vrot.slane %v1718_v7, %v3118_v28  ;;  %v2283_v7 = vsel %vm297_vm4, %v2282_v55, %v2281_v56 }
 0x63a   : > { %v2285_v14 = vsel %vm300_vm5, %v2284_v0, %v2283_v7 }
 0x63b   : > { %v1727_v16 = vcombine.high %v1725_v10, %v1725_v10  ;;  %v1741_v18 = vrot.slane %v1725_v10, %v3118_v28  ;;  %v1748_v19 = vrot.slane %v1726_v11, %v3118_v28  ;;  %v1756_v20 = vcombine.high %v1734_v12, %v1734_v12  ;;  %1768 = vst.msk [vmem:[%s3130_s16 + $0x5] sm:$0x1] %vm535_vm10, %v1734_v12  ;;  %v2267_v12 = vld [vmem:[%s3026_s11 + $0x78] sm:$0x1] }
 0x63c   : > { %v2288_v15 = vrot.slane %v2267_v12, 1 }
 0x63d   : > { %v1755_v23 = vrot.slane %v1727_v16, %v3118_v28  ;;  %v1757_v24 = vcombine.high %v1741_v18, %v1741_v18  ;;  %v1758_v25 = vcombine.high %v1748_v19, %v1748_v19  ;;  %1769 = vst.msk [vmem:[%s3130_s16 + $0x15] sm:$0x1] %vm535_vm10, %v1748_v19  ;;  %1770 = vst.msk [vmem:[%s3130_s16 + $0x25] sm:$0x1] %vm535_vm10, %v1756_v20 }
 0x63e   : > { %1772 = vst.msk [vmem:[%s3130_s16 + $0x45] sm:$0x1] %vm535_vm10, %v1741_v18  ;;  %v1874_v27 = vpop.f32.mrb[12].mxu0  ;;  %v2287_v16 = vsel %vm303_vm6, %v2286_v13, %v2285_v14 }
 0x63f   : > { %v1759_v29 = vcombine.high %v1755_v23, %v1755_v23  ;;  %1771 = vst.msk [vmem:[%s3130_s16 + $0x35] sm:$0x1] %vm535_vm10, %v1758_v25  ;;  %1773 = vst.msk [vmem:[%s3130_s16 + $0x55] sm:$0x1] %vm535_vm10, %v1755_v23  ;;  %v1878_v30 = vmul.f32 %v1874_v27, %v3323_v63  ;;  %v2795_v31 = vpop.f32.mrb[13].mxu0  ;;  %v2289_v18 = vsel %vm306_vm7, %v2288_v15, %v2287_v16 }
 0x640   : > { %1774 = vst.msk [vmem:[%s3130_s16 + $0x65] sm:$0x1] %vm535_vm10, %v1757_v24 }
 0x641   : > { %1775 = vst.msk [vmem:[%s3130_s16 + $0x75] sm:$0x1] %vm535_vm10, %v1759_v29  ;;  %2801 = vmatmul.mubr.msk.f32.vlgmr.msra.gmra.mrb[12].mxu1 %vm403_vm9, %v1878_v30 }
 0x642   : > { %2904 = vmatpush3.bf16.msra.mxu1 %v3253_v17  ;;  %2811 = vmatprep.mubr.msk.f32.mxu1 %vm2951_vm0, %v2952_v6 }
 0x643   : > { %2905 = vmatprep.subr.bf16.mxu1 %v2950_v3 }
 0x646   : > { %2907 = vmatpush3.bf16.msra.mxu1 %v3274_v50 }
 0x647   : > { %2917 = vmatprep.subr.bf16.mxu1 %v2950_v3 }
 0x649   : > { %2812 = vmatmul.mubr.msk.f32.vlgmr.msra.gmra.mrb[14].mxu1 %vm308_vm8, %v2047_v38 }
 0x64a   : > { %2919 = vmatpush3.bf16.msra.mxu1 %v3292_v32  ;;  %2836 = vmatprep.mubr.msk.f32.mxu1 %vm2951_vm0, %v2952_v6 }
 0x714   : > { %v1948_v45 = vpop.f32.mrb[12].mxu1 }
 0x715   : > { %v1953_v48 = vcombine.high %v1948_v45, %v1948_v45  ;;  %v1960_v32 = vrot.slane %v1948_v45, %v3118_v28  ;;  %v2802_v49 = vpop.f32.mrb[13].mxu1 }
 0x717   : > { %v1967_v52 = vrot.slane %v1953_v48, %v3118_v28  ;;  %v1968_v4 = vcombine.high %v1960_v32, %v1960_v32  ;;  %v1976_v53 = vrot.slane %v1960_v32, %v3118_v28 }
 0x719   : > { %v1969_v57 = vcombine.high %v1967_v52, %v1967_v52  ;;  %v1983_v58 = vrot.slane %v1967_v52, %v3118_v28  ;;  %v1990_v60 = vrot.slane %v1968_v4, %v3118_v28  ;;  %v1998_v61 = vcombine.high %v1976_v53, %v1976_v53  ;;  %2010 = vst.msk [vmem:[%s3130_s16 + $0x6] sm:$0x1] %vm535_vm10, %v1976_v53 }
 0x71b   : > { %v1997_v1 = vrot.slane %v1969_v57, %v3118_v28  ;;  %v1999_v2 = vcombine.high %v1983_v58, %v1983_v58  ;;  %v2000_v5 = vcombine.high %v1990_v60, %v1990_v60  ;;  %2011 = vst.msk [vmem:[%s3130_s16 + $0x16] sm:$0x1] %vm535_vm10, %v1990_v60  ;;  %2012 = vst.msk [vmem:[%s3130_s16 + $0x26] sm:$0x1] %vm535_vm10, %v1998_v61 }
 0x71c   : > { %2014 = vst.msk [vmem:[%s3130_s16 + $0x46] sm:$0x1] %vm535_vm10, %v1983_v58  ;;  %v2116_v8 = vpop.f32.mrb[14].mxu1 }
 0x71d   : > { %v2001_v9 = vcombine.high %v1997_v1, %v1997_v1  ;;  %2013 = vst.msk [vmem:[%s3130_s16 + $0x36] sm:$0x1] %vm535_vm10, %v2000_v5  ;;  %2015 = vst.msk [vmem:[%s3130_s16 + $0x56] sm:$0x1] %vm535_vm10, %v1997_v1  ;;  %v2120_v10 = vmul.f32 %v2116_v8, %v3323_v63  ;;  %v2813_v11 = vpop.f32.mrb[15].mxu1 }
 0x71e   : > { %2016 = vst.msk [vmem:[%s3130_s16 + $0x66] sm:$0x1] %vm535_vm10, %v1999_v2 }
 0x71f   : > { %2017 = vst.msk [vmem:[%s3130_s16 + $0x76] sm:$0x1] %vm535_vm10, %v2001_v9  ;;  %2819 = vmatmul.mubr.msk.f32.vlgmr.msra.gmra.mrb[14].mxu0 %vm403_vm9, %v2120_v10 }
 0x720   : > { %2913 = vmatpush3.bf16.msra.mxu0 %v3253_v17  ;;  %2829 = vmatprep.mubr.msk.f32.mxu0 %vm2951_vm0, %v2952_v6 }
 0x721   : > { %2914 = vmatprep.subr.bf16.mxu0 %v2950_v3 }
 0x724   : > { %2916 = vmatpush3.bf16.msra.mxu0 %v3274_v50 }
 0x727   : > { %2830 = vmatmul.mubr.msk.f32.vlgmr.msra.gmra.mrb[16].mxu0 %vm308_vm8, %v2289_v18 }
 0x7f2   : > { %v2190_v19 = vpop.f32.mrb[14].mxu0 }
 0x7f3   : > { %v2195_v20 = vcombine.high %v2190_v19, %v2190_v19  ;;  %v2202_v17 = vrot.slane %v2190_v19, %v3118_v28  ;;  %v2820_v6 = vpop.f32.mrb[15].mxu0 }
 0x7f5   : > { %v2209_v21 = vrot.slane %v2195_v20, %v3118_v28  ;;  %v2210_v3 = vcombine.high %v2202_v17, %v2202_v17  ;;  %v2218_v22 = vrot.slane %v2202_v17, %v3118_v28 }
 0x7f7   : > { %v2211_v50 = vcombine.high %v2209_v21, %v2209_v21  ;;  %v2225_v23 = vrot.slane %v2209_v21, %v3118_v28  ;;  %v2232_v24 = vrot.slane %v2210_v3, %v3118_v28  ;;  %v2240_v25 = vcombine.high %v2218_v22, %v2218_v22  ;;  %2252 = vst.msk [vmem:[%s3130_s16 + $0x7] sm:$0x1] %vm535_vm10, %v2218_v22 }
 0x7f9   : > { %v2239_v26 = vrot.slane %v2211_v50, %v3118_v28  ;;  %v2241_v27 = vcombine.high %v2225_v23, %v2225_v23  ;;  %v2242_v29 = vcombine.high %v2232_v24, %v2232_v24  ;;  %2253 = vst.msk [vmem:[%s3130_s16 + $0x17] sm:$0x1] %vm535_vm10, %v2232_v24  ;;  %2254 = vst.msk [vmem:[%s3130_s16 + $0x27] sm:$0x1] %vm535_vm10, %v2240_v25 }
 0x7fa   : > { %2256 = vst.msk [vmem:[%s3130_s16 + $0x47] sm:$0x1] %vm535_vm10, %v2225_v23  ;;  %v2358_v30 = vpop.f32.mrb[16].mxu0 }
 0x7fb   : > { %v2243_v31 = vcombine.high %v2239_v26, %v2239_v26  ;;  %2255 = vst.msk [vmem:[%s3130_s16 + $0x37] sm:$0x1] %vm535_vm10, %v2242_v29  ;;  %2257 = vst.msk [vmem:[%s3130_s16 + $0x57] sm:$0x1] %vm535_vm10, %v2239_v26  ;;  %v2362_v33 = vmul.f32 %v2358_v30, %v3323_v63  ;;  %v2831_v34 = vpop.f32.mrb[17].mxu0 }
 0x7fc   : > { %2258 = vst.msk [vmem:[%s3130_s16 + $0x67] sm:$0x1] %vm535_vm10, %v2241_v27 }
 0x7fd   : > { %2259 = vst.msk [vmem:[%s3130_s16 + $0x77] sm:$0x1] %vm535_vm10, %v2243_v31  ;;  %2837 = vmatmul.mubr.msk.f32.vlgmr.msra.gmra.mrb[16].mxu1 %vm403_vm9, %v2362_v33 }
 0x8d0   : > { %v2432_v35 = vpop.f32.mrb[16].mxu1 }
 0x8d1   : > { %v2437_v36 = vcombine.high %v2432_v35, %v2432_v35  ;;  %v2444_v37 = vrot.slane %v2432_v35, %v3118_v28  ;;  %v2838_v38 = vpop.f32.mrb[17].mxu1 }
 0x8d3   : > { %v2451_v39 = vrot.slane %v2437_v36, %v3118_v28  ;;  %v2452_v40 = vcombine.high %v2444_v37, %v2444_v37  ;;  %v2460_v63 = vrot.slane %v2444_v37, %v3118_v28 }
 0x8d5   : > { %v2453_v41 = vcombine.high %v2451_v39, %v2451_v39  ;;  %v2467_v42 = vrot.slane %v2451_v39, %v3118_v28  ;;  %v2474_v43 = vrot.slane %v2452_v40, %v3118_v28  ;;  %v2482_v44 = vcombine.high %v2460_v63, %v2460_v63  ;;  %2494 = vst.msk [vmem:[%s3130_s16 + $0x8] sm:$0x1] %vm535_vm10, %v2460_v63 }
 0x8d7   : > { %v2481_v59 = vrot.slane %v2453_v41, %v3118_v28  ;;  %v2483_v45 = vcombine.high %v2467_v42, %v2467_v42  ;;  %v2484_v46 = vcombine.high %v2474_v43, %v2474_v43  ;;  %2495 = vst.msk [vmem:[%s3130_s16 + $0x18] sm:$0x1] %vm535_vm10, %v2474_v43  ;;  %2496 = vst.msk [vmem:[%s3130_s16 + $0x28] sm:$0x1] %vm535_vm10, %v2482_v44 }
 0x8d8   : > { %2498 = vst.msk [vmem:[%s3130_s16 + $0x48] sm:$0x1] %vm535_vm10, %v2467_v42 }
 0x8d9   : > { %v2485_v47 = vcombine.high %v2481_v59, %v2481_v59  ;;  %2497 = vst.msk [vmem:[%s3130_s16 + $0x38] sm:$0x1] %vm535_vm10, %v2484_v46  ;;  %2499 = vst.msk [vmem:[%s3130_s16 + $0x58] sm:$0x1] %vm535_vm10, %v2481_v59 }
 0x8da   : > { %2500 = vst.msk [vmem:[%s3130_s16 + $0x68] sm:$0x1] %vm535_vm10, %v2483_v45 }
 0x8db   : > { %2501 = vst.msk [vmem:[%s3130_s16 + $0x78] sm:$0x1] %vm535_vm10, %v2485_v47 }
 0x8dc PF: > { %s16_s21 = sadd.s32 1, %s2948_s21  }
 0x8dd   : > { %p13_p4 = scmp.ge.s32.totalorder %s16_s21, 4  }
 0x8df   :  { %15 = sbr.rel (!%p13_p4) target bundleno = 1 (0x1), region = 77 }

</bundles_post_ra>
